<compile_context>
chip_gen: v7x
topology: tpu7x:2x2x1
jax: 0.10.0
libtpu: 0.0.40
codegen_flags: <defaults>
</compile_context>

<pallas_src>
import functools

import jax
import jax.numpy as jnp
from jax.experimental import pallas as pl
from jax.experimental.pallas import tpu as pltpu

_LANE = 128


def _intent_classifier_kernel(x_ref, w_ref, b_ref, o_ref):
    # x_ref: [TB, D]      streamed batch tile
    # w_ref: [D, L_pad]   pre-transposed, zero-padded weight (VMEM-resident)
    # b_ref: [1, L_pad]   zero-padded bias (VMEM-resident)
    # o_ref: [TB, L_pad]  lane-dense logits tile
    #
    # Dropout with rate=0.0 is the identity, so x feeds the matmul directly.
    acc = jnp.dot(x_ref[...], w_ref[...], preferred_element_type=jnp.float32)
    o_ref[...] = (acc + b_ref[...].astype(jnp.float32)).astype(o_ref.dtype)


def _vmem_capacity_bytes():
    try:
        return int(pltpu.get_tpu_info().vmem_capacity_bytes)
    except Exception:
        return 64 * 1024 * 1024  # conservative: v7x per-TensorCore VMEM


def _is_multicore_chip():
    # v7x has 2 TensorCores per chip; v5e/v6e have 1.
    try:
        kind = jax.devices()[0].device_kind.lower()
        return "7" in kind
    except Exception:
        return False


def _pick_block_b(B, D, itemsize):
    # ~4 MiB of x per pipeline buffer: big enough to amortize the ~0.35 us
    # per-grid-step overhead (>=85% of HBM roofline at 512+ rows in measured
    # sweeps), small enough to triple-buffer inside every generation's VMEM
    # (including v7x's 64 MiB per core).
    target_bytes = 4 << 20
    rows = max(8, target_bytes // max(D * itemsize, 1))
    block_b = min(B, 2048, rows)
    if block_b < B:
        # Align to MXU M granularity / dtype sublane packing.
        if block_b >= 256:
            block_b = (block_b // 256) * 256
        elif block_b >= 128:
            block_b = 128
        else:
            align = 16 if itemsize == 2 else 8
            block_b = max(align, (block_b // align) * align)
        block_b = min(block_b, B)
    return block_b


@functools.partial(jax.jit, static_argnames=("block_b", "use_pallas"))
def intent_classifier(x, weight, bias, *, block_b=None, use_pallas=None):
    """Pallas equivalent of IntentClassifier.forward (eval mode, dropout p=0).

    Args:
      x:      [B, D]  input features (f32 or bf16), e.g. pooled BERT output.
      weight: [L, D]  PyTorch-layout Linear weight.
      bias:   [L]     Linear bias.
      block_b:    optional static batch-tile size override.
      use_pallas: True/False to force the Pallas / XLA path; None = heuristic.
    Returns:
      logits: [B, L]  intent logits in x.dtype.
    """
    B, D = x.shape
    L, D_w = weight.shape
    assert D == D_w, f"feature dim mismatch: x has {D}, weight has {D_w}"
    assert bias.shape == (L,)

    if use_pallas is None:
        # Tiny heads: pallas_call fixed overhead dwarfs the work; let XLA do it
        # (or, better, fuse into the upstream pooler kernel).
        use_pallas = (B * D) >= (64 * 1024)
    if not use_pallas:
        acc = jnp.dot(x, weight.T, preferred_element_type=jnp.float32)
        return (acc + bias.astype(jnp.float32)).astype(x.dtype)

    itemsize = x.dtype.itemsize
    if block_b is None:
        block_b = _pick_block_b(B, D, itemsize)
    block_b = min(block_b, B)
    num_blocks = pl.cdiv(B, block_b)

    # --- parameter prep (once per call, tiny) -----------------------------
    # Pad L to a full lane width and pre-transpose to the canonical MXU RHS
    # shape [K, N] = [D, L_pad]; padded columns/entries are exactly zero so
    # the padded logits are zero and are sliced off below.
    L_pad = max(_LANE, ((L + _LANE - 1) // _LANE) * _LANE)
    pad_cols = L_pad - L
    w_pad = jnp.pad(weight.T, ((0, 0), (0, pad_cols)))          # [D, L_pad]
    b_pad = jnp.pad(bias, (0, pad_cols)).reshape(1, L_pad)      # [1, L_pad]

    # --- VMEM budget (sized from the actual footprint) --------------------
    n_x_bufs = 3 if num_blocks >= 3 else 2
    vmem_needed = (n_x_bufs * block_b * D * itemsize
                   + D * L_pad * w_pad.dtype.itemsize
                   + L_pad * b_pad.dtype.itemsize
                   + 2 * block_b * L_pad * itemsize)
    vmem_cap = _vmem_capacity_bytes()
    vmem_limit = min(int(0.9 * vmem_cap), max(2 * vmem_needed, 4 << 20))

    # --- specs -------------------------------------------------------------
    if num_blocks >= 3:
        x_spec = pl.BlockSpec((block_b, D), lambda i: (i, 0),
                              pipeline_mode=pl.Buffered(3))
    else:
        x_spec = pl.BlockSpec((block_b, D), lambda i: (i, 0))

    if _is_multicore_chip() and num_blocks > 1:
        dim_sem = (pltpu.CORE_PARALLEL,)   # actually engage both v7x cores
    else:
        dim_sem = ("parallel",)

    cost = pl.CostEstimate(
        flops=2 * B * D * L_pad,
        transcendentals=0,
        bytes_accessed=(B * D * itemsize
                        + D * L_pad * w_pad.dtype.itemsize
                        + L_pad * b_pad.dtype.itemsize
                        + B * L_pad * itemsize),
    )

    out_pad = pl.pallas_call(
        _intent_classifier_kernel,
        out_shape=jax.ShapeDtypeStruct((B, L_pad), x.dtype),
        grid=(num_blocks,),
        in_specs=[
            x_spec,                                          # stream x tiles
            pl.BlockSpec((D, L_pad), lambda i: (0, 0)),      # weight: resident
            pl.BlockSpec((1, L_pad), lambda i: (0, 0)),      # bias:   resident
        ],
        out_specs=pl.BlockSpec((block_b, L_pad), lambda i: (i, 0)),
        compiler_params=pltpu.CompilerParams(
            dimension_semantics=dim_sem,
            vmem_limit_bytes=int(vmem_limit),
        ),
        cost_estimate=cost,
    )(x, w_pad, b_pad)

    return out_pad[:, :L]


if __name__ == "__main__":
    # Small shapes consistent with the module: batch=8, dim_in=32, labels=8.
    B, DIM_IN, NUM_INTENTS = 8, 32, 8

    key = jax.random.PRNGKey(0)
    k_x, k_w, k_b = jax.random.split(key, 3)

    x = jax.random.normal(k_x, (B, DIM_IN), dtype=jnp.float32)
    # Deterministic "nn.Linear"-style parameters (synthetic, not a checkpoint).
    bound = 1.0 / jnp.sqrt(DIM_IN)
    weight = jax.random.uniform(k_w, (NUM_INTENTS, DIM_IN),
                                minval=-bound, maxval=bound, dtype=jnp.float32)
    bias = jax.random.uniform(k_b, (NUM_INTENTS,),
                              minval=-bound, maxval=bound, dtype=jnp.float32)

    # Force the Pallas path so the kernel itself is exercised at the toy shape.
    out = intent_classifier(x, weight, bias, use_pallas=True)
    jax.block_until_ready(out)
    ref = x @ weight.T + bias
    assert out.shape == (B, NUM_INTENTS)
    assert jnp.allclose(out, ref, atol=1e-5, rtol=1e-5)

    # Also exercise the multi-block, lane-dense tiled path at a modest size.
    B2, D2 = 1024, 256
    k1, k2, k3 = jax.random.split(jax.random.PRNGKey(1), 3)
    x2 = jax.random.normal(k1, (B2, D2), dtype=jnp.float32)
    w2 = jax.random.uniform(k2, (NUM_INTENTS, D2),
                            minval=-0.1, maxval=0.1, dtype=jnp.float32)
    b2 = jax.random.uniform(k3, (NUM_INTENTS,),
                            minval=-0.1, maxval=0.1, dtype=jnp.float32)
    out2 = intent_classifier(x2, w2, b2, use_pallas=True, block_b=256)
    jax.block_until_ready(out2)
    ref2 = x2 @ w2.T + b2
    assert out2.shape == (B2, NUM_INTENTS)
    assert jnp.allclose(out2, ref2, atol=1e-4, rtol=1e-4)

    print("KERNEL_OK")
</pallas_src>

<mosaic_0001>
module attributes {stable_mosaic.version = 11 : i64} {
  func.func @_intent_classifier_kernel(%arg0: i32, %arg1: memref<8x32xf32, #tpu.memory_space<vmem>>, %arg2: memref<32x128xf32, #tpu.memory_space<vmem>>, %arg3: memref<1x128xf32, #tpu.memory_space<vmem>>, %arg4: memref<8x128xf32, #tpu.memory_space<vmem>>) attributes {dimension_semantics = [#tpu.dimension_semantics<parallel>], iteration_bounds = array<i64: 1>, scalar_prefetch = 0 : i64, scratch_operands = 0 : i64, tpu.core_type = #tpu.core_type<tc>, window_params = [{transform_indices = @transform_0, window_bounds = array<i64: 8, 32>}, {pipeline_mode = #tpu.pipeline_mode<synchronous>, transform_indices = @transform_1, window_bounds = array<i64: 32, 128>}, {pipeline_mode = #tpu.pipeline_mode<synchronous>, transform_indices = @transform_2, window_bounds = array<i64: 1, 128>}, {transform_indices = @transform_3, window_bounds = array<i64: 8, 128>}]} {
    %c0 = arith.constant 0 : index
    %c0_0 = arith.constant 0 : index
    %0 = vector.load %arg1[%c0, %c0_0] : memref<8x32xf32, #tpu.memory_space<vmem>>, vector<8x32xf32>
    %c0_1 = arith.constant 0 : index
    %c0_2 = arith.constant 0 : index
    %1 = vector.load %arg2[%c0_1, %c0_2] : memref<32x128xf32, #tpu.memory_space<vmem>>, vector<32x128xf32>
    %cst = arith.constant dense<0.000000e+00> : vector<8x128xf32>
    %2 = tpu.matmul %0, %1, %cst {dimension_numbers = #tpu.dot_dimension_numbers<[1], [0], [0], [1], [0, 0, 1, 1], [], []>} : vector<8x32xf32>, vector<32x128xf32>, vector<8x128xf32> -> vector<8x128xf32>
    %c0_3 = arith.constant 0 : index
    %c0_4 = arith.constant 0 : index
    %3 = vector.load %arg3[%c0_3, %c0_4] : memref<1x128xf32, #tpu.memory_space<vmem>>, vector<1x128xf32>
    %4 = vector.broadcast %3 : vector<1x128xf32> to vector<8x128xf32>
    %5 = arith.addf %2, %4 : vector<8x128xf32>
    %c0_5 = arith.constant 0 : index
    %c0_6 = arith.constant 0 : index
    %6 = vector.load %arg4[%c0_5, %c0_6] : memref<8x128xf32, #tpu.memory_space<vmem>>, vector<8x128xf32>
    tpu.vector_store %arg4[%c0_5, %c0_6], %5 {strides = array<i32>} : memref<8x128xf32, #tpu.memory_space<vmem>>, vector<8x128xf32>,
    return
  }
  func.func @transform_0(%arg0: i32) -> (i32, i32) {
    %c0_i32 = arith.constant 0 : i32
    %c0_i32_0 = arith.constant 0 : i32
    return %arg0, %c0_i32 : i32, i32
  }
  func.func @transform_1(%arg0: i32) -> (i32, i32) {
    %c0_i32 = arith.constant 0 : i32
    %c0_i32_0 = arith.constant 0 : i32
    %c0_i32_1 = arith.constant 0 : i32
    return %c0_i32, %c0_i32_0 : i32, i32
  }
  func.func @transform_2(%arg0: i32) -> (i32, i32) {
    %c0_i32 = arith.constant 0 : i32
    %c0_i32_0 = arith.constant 0 : i32
    %c0_i32_1 = arith.constant 0 : i32
    return %c0_i32, %c0_i32_0 : i32, i32
  }
  func.func @transform_3(%arg0: i32) -> (i32, i32) {
    %c0_i32 = arith.constant 0 : i32
    %c0_i32_0 = arith.constant 0 : i32
    return %arg0, %c0_i32 : i32, i32
  }
}

</mosaic_0001>

<bundles_post_ra>
// kernel: intent_classifier.1
= control target key start
LH: loop header
LB: loop body
LE: loop exit
PB: predicated region body
PF: predicated region fallthrough
CT: control target
= control target key end

     0   :  { %v168_v3 = vmov 0.0|0.0   ;;  %vm169_vm0 = vmmov 0   ;;  %v170_v6 = vmov 0.0   ;;  %s222_s0 = inlined_call_operand.vmem [shape: f32[8,32], index: 0, kind: input, shape index: {}]   ;;  %s223_s1 = inlined_call_operand.vmem [shape: f32[32,128], index: 1, kind: input, shape index: {}]   ;;  %s224_s2 = inlined_call_operand.vmem [shape: f32[1,128], index: 2, kind: input, shape index: {}]   ;;  %s225_s3 = inlined_call_operand.hbm [shape: f32[8,128], index: 3, kind: output, shape index: {}]  }
   0x1   :  { %v16_v0 = vld [vmem:[%s223_s1] sm:$0xff]  ;;  %v17_v1 = vld [vmem:[%s223_s1 + $0x8] sm:$0xff]  ;;  %v18_v2 = vld [vmem:[%s223_s1 + $0x10] sm:$0xff]  ;;  %134 = vmatprep.subr.bf16.mxu0 %v168_v3  ;;  %131 = vmatprep.mubr.msk.f32.mxu0 %vm169_vm0, %v170_v6 }
   0x2   :  { %v135_v4 = vpack.c.bf16 %v17_v1, %v16_v0  ;;  %v19_v5 = vld [vmem:[%s223_s1 + $0x18] sm:$0xff] }
   0x3   :  { %8 = vsyncpa [#allocation3], 0  ;;  %v138_v7 = vpack.c.bf16 %v19_v5, %v18_v2  ;;  %v15_v8 = vld [vmem:[%s222_s0] sm:$0xff]  ;;  %vm27_vm1 = vcmask 261120   ;;  %s171_s24 = smov [#allocation2]  }
   0x4   :  { %136 = vmatpush3.bf16.msra.mxu0 %v135_v4  ;;  %v116_v9 = vld [vmem:[%s224_s2] ss:$0 sm:$0xff]  ;;  %s108_s1 = sshll.u32 %s171_s24, 4  ;;  %s109_s1 = int_to_ptr.vmem [resolvable:$true] %s108_s1 }
   0x5   :  { %137 = vmatprep.subr.bf16.mxu0 %v168_v3  ;;  %s144_s25 = scalar_lea.vmem %s109_s1, 128  ;;  %p149_p1 = scmp.lt.s32.totalorder %s109_s1, %s109_s1 }
   0x6   :  { %p145_p0 = scmp.ne.s32.totalorder %s109_s1, %s144_s25  ;;  %p150_p2 = scmp.lt.s32.totalorder %s144_s25, %s144_s25 }
   0x8   :  { %139 = vmatpush3.bf16.msra.mxu0 %v138_v7  ;;  %p151_p3 = por %p150_p2, %p149_p1 }
   0xa   :  { %p152_p4 = pnand %p151_p3, %p145_p0 }
   0xb   :  { %132 = vmatmul.mubr.msk.f32.vlgmr.msra.gmra.mrb[0].mxu0 %vm27_vm1, %v15_v8 }
  0xde   :  { %v97_v10 = vpop.f32.mrb[0].mxu0 }
  0xdf   :  { %v98_v11 = vadd.f32 %v116_v9, %v97_v10  ;;  %v133_v12 = vpop.f32.mrb[1].mxu0 }
  0xe1   :  { %101 = vst [vmem:[#allocation2] sm:$0xff] %v98_v11 }
  0xe2   :  { %155 = shalt.err (!%p152_p4)
}
  0xe3   :  { %s156_s27 = scalar_lea.hbm %s225_s3, 128 }
  0xe4   :  { %p157_p5 = scmp.ne.s32.totalorder %s225_s3, %s156_s27  ;;  %p160_p6 = scmp.lt.u32.totalorder %s156_s27, %s225_s3 }
  0xe6   :  { %p162_p7 = pnand %p160_p6, %p157_p5 }
  0xe8   :  { %165 = shalt.err (!%p162_p7)
}
  0xe9   :  { %111 = dma.vmem_to_hbm [thread:$0]  %s109_s1, 128, %s225_s3, [#allocation3]  }
  0xea   :  { %166 = dma.done.wait [#allocation3], 128  }
  0xeb   :  { %167 = vsyncadd [#allocation3], 4294967168 }
  0xec   :  { %115 = vsyncpa [#allocation3], 1 }

</bundles_post_ra>
